<compile_context>
chip_gen: v5e
topology: v5e:2x2
jax: 0.10.0
libtpu: 0.0.40
codegen_flags: <defaults>
</compile_context>

<pallas_src>
import jax
import jax.numpy as jnp
from jax.experimental import pallas as pl
from jax.experimental.pallas import tpu as pltpu


def _binarize_kernel(x_ref, o_ref):
    # (clamp(x,-1,1) >= 0) == (x >= 0); compare in native dtype, store f32.
    o_ref[...] = (x_ref[...] >= 0).astype(jnp.float32)


def _tpu_generation():
    """Best-effort TPU generation sniff; None if it can't be determined."""
    try:
        kind = jax.devices()[0].device_kind.lower()
    except Exception:
        return None
    for g in (7, 6, 5, 4):
        if ("v%d" % g) in kind:
            return g
    return None


def _sublane_multiple(dtype) -> int:
    """Rows per fully-packed sublane tile for the input dtype."""
    itemsize = jnp.dtype(dtype).itemsize
    if itemsize >= 4:
        return 8      # f32
    if itemsize == 2:
        return 16     # bf16 / f16: 2 rows per sublane
    return 32         # int8 / fp8: 4 rows per sublane


def _pick_block_rows(rows: int, lane: int, target_block_bytes: int, sub: int) -> int:
    """Rows per block: ~target f32-output bytes, sublane-aligned, divisor-preferring."""
    br = (target_block_bytes // (lane * 4)) // sub * sub
    br = max(sub, br)
    if br >= rows:
        return rows  # single full-extent block (always legal)
    # Prefer a block height that exactly divides `rows` within ~25% of target,
    # so the final block's store is an unmasked full-width vst.
    lo = max(sub, (int(br * 0.75) // sub) * sub)
    hi = (int(br * 1.25) // sub) * sub
    c = hi
    while c >= lo:
        if rows % c == 0:
            return c
        c -= sub
    return br


def _binarize_2d(x2d: jax.Array, br: int, vmem_limit_bytes) -> jax.Array:
    rows, lane = x2d.shape
    grid = (pl.cdiv(rows, br),)
    in_itemsize = jnp.dtype(x2d.dtype).itemsize
    bytes_accessed = rows * lane * (in_itemsize + 4)

    cp_kwargs = dict(dimension_semantics=("parallel",))
    if vmem_limit_bytes is not None:
        cp_kwargs["vmem_limit_bytes"] = int(vmem_limit_bytes)

    return pl.pallas_call(
        _binarize_kernel,
        out_shape=jax.ShapeDtypeStruct((rows, lane), jnp.float32),
        grid_spec=pltpu.PrefetchScalarGridSpec(
            num_scalar_prefetch=0,
            grid=grid,
            in_specs=[pl.BlockSpec((br, lane), lambda i: (i, 0))],
            out_specs=pl.BlockSpec((br, lane), lambda i: (i, 0)),
        ),
        compiler_params=pltpu.CompilerParams(**cp_kwargs),
        cost_estimate=pl.CostEstimate(
            flops=rows * lane, transcendentals=0, bytes_accessed=bytes_accessed),
    )(x2d)


def diff_binarize(x: jax.Array, *, target_block_bytes: int | None = None) -> jax.Array:
    """Elementwise binarize-with-STE forward: (clamp(x,-1,1) >= 0).float()."""
    orig_shape = x.shape
    total = int(x.size)
    if total == 0:
        return jnp.zeros(orig_shape, jnp.float32)

    gen = _tpu_generation()
    if target_block_bytes is None:
        if gen is not None and gen >= 7:
            target_block_bytes = 8 * 1024 * 1024   # v7x: big blocks vs 3.2 TB/s HBM
        elif gen == 6:
            target_block_bytes = 4 * 1024 * 1024   # v6e: fits 32 MiB scoped VMEM
        else:
            target_block_bytes = 2 * 1024 * 1024   # v5e / unknown: 16 MiB scoped VMEM

    sub = _sublane_multiple(x.dtype)
    in_itemsize = jnp.dtype(x.dtype).itemsize
    x_flat = x.reshape(-1)

    bulk = (total // 128) * 128
    tail = total - bulk

    out_parts = []
    if bulk:
        # Widest lane-dense last dim (multiple of 128) dividing the bulk.
        lane = 128
        for w in (2048, 1024, 512, 256, 128):
            if bulk % w == 0:
                lane = w
                break
        rows = bulk // lane
        br = _pick_block_rows(rows, lane, target_block_bytes, sub)

        # v7x: 2 TensorCores with per-TC HBM paths — never leave one idle on a
        # mid-size single-block grid; split into two blocks instead.
        if (gen is not None and gen >= 7 and br >= rows
                and rows * lane * 4 > (1 << 20) and rows >= 2 * sub):
            half = (rows + 1) // 2
            br = ((half + sub - 1) // sub) * sub
            br = min(br, rows)

        # Raise the scoped-VMEM limit only when the double-buffered blocks need it.
        block_bytes = br * lane * (4 + in_itemsize)
        vmem_need = 2 * block_bytes
        vmem_limit = None
        if vmem_need > (14 << 20):
            vmem_limit = min(max(vmem_need + (8 << 20), 32 << 20), 56 << 20)

        x_bulk = x_flat if tail == 0 else x_flat[:bulk]
        bulk_out = _binarize_2d(x_bulk.reshape(rows, lane), br, vmem_limit)
        out_parts.append(bulk_out.reshape(-1))

    if tail:
        # Rare path: element count not a multiple of 128. The <128-element tail
        # is handled with plain jnp (negligible traffic; no pad / no slice).
        out_parts.append((x_flat[bulk:] >= 0).astype(jnp.float32))

    out = out_parts[0] if len(out_parts) == 1 else jnp.concatenate(out_parts)
    return out.reshape(orig_shape)


# TODO(synk): backward pass (STE: grad zeroed where |x| < 1 per the reference
# autograd Function) is not part of the forward kernel; only forward is here.


if __name__ == "__main__":
    key = jax.random.PRNGKey(0)

    # Primary NCHW input, small shape consistent with the module's elementwise forward.
    x = jax.random.normal(key, (2, 4, 16, 16), dtype=jnp.float32) * 2.0
    out = diff_binarize(x)
    jax.block_until_ready(out)
    ref = (jnp.clip(x, -1.0, 1.0) >= 0.0).astype(jnp.float32)
    assert out.shape == x.shape
    assert out.dtype == jnp.float32
    assert bool(jnp.all(out == ref))

    # bf16 input whose element count (192) is NOT a multiple of 128:
    # exercises the kernel-bulk + jnp-tail path (no pad, no output slice).
    xb = jax.random.normal(jax.random.PRNGKey(1), (1, 3, 8, 8), dtype=jnp.bfloat16)
    outb = diff_binarize(xb)
    jax.block_until_ready(outb)
    refb = (jnp.clip(xb.astype(jnp.float32), -1.0, 1.0) >= 0.0).astype(jnp.float32)
    assert outb.shape == xb.shape and outb.dtype == jnp.float32
    assert bool(jnp.all(outb == refb))

    # Multi-block path with a forced-small block target (exercises the
    # divisor-preferring block-row selection and the "parallel" grid axis).
    xc = jax.random.normal(jax.random.PRNGKey(2), (16, 16, 32, 32), dtype=jnp.float32)
    outc = diff_binarize(xc, target_block_bytes=64 * 1024)
    jax.block_until_ready(outc)
    refc = (xc >= 0.0).astype(jnp.float32)
    assert bool(jnp.all(outc == refc))

    print("KERNEL_OK")
</pallas_src>

<mosaic_0001>
module attributes {stable_mosaic.version = 11 : i64} {
  func.func @_binarize_kernel(%arg0: i32, %arg1: memref<1x2048xf32, #tpu.memory_space<vmem>>, %arg2: memref<1x2048xf32, #tpu.memory_space<vmem>>) attributes {dimension_semantics = [#tpu.dimension_semantics<parallel>], iteration_bounds = array<i64: 1>, scalar_prefetch = 0 : i64, scratch_operands = 0 : i64, tpu.core_type = #tpu.core_type<tc>, window_params = [{transform_indices = @transform_0, window_bounds = array<i64: 1, 2048>}, {transform_indices = @transform_1, window_bounds = array<i64: 1, 2048>}]} {
    %c0 = arith.constant 0 : index
    %c0_0 = arith.constant 0 : index
    %0 = vector.load %arg1[%c0, %c0_0] : memref<1x2048xf32, #tpu.memory_space<vmem>>, vector<1x2048xf32>
    %cst = arith.constant 0.000000e+00 : f32
    %1 = vector.broadcast %cst : f32 to vector<1x2048xf32>
    %2 = arith.cmpf oge, %0, %1 : vector<1x2048xf32>
    %3 = arith.extui %2 : vector<1x2048xi1> to vector<1x2048xi32>
    %4 = arith.sitofp %3 : vector<1x2048xi32> to vector<1x2048xf32>
    %c0_1 = arith.constant 0 : index
    %c0_2 = arith.constant 0 : index
    %5 = vector.load %arg2[%c0_1, %c0_2] : memref<1x2048xf32, #tpu.memory_space<vmem>>, vector<1x2048xf32>
    tpu.vector_store %arg2[%c0_1, %c0_2], %4 {strides = array<i32>} : memref<1x2048xf32, #tpu.memory_space<vmem>>, vector<1x2048xf32>,
    return
  }
  func.func @transform_0(%arg0: i32) -> (i32, i32) {
    %c0_i32 = arith.constant 0 : i32
    %c0_i32_0 = arith.constant 0 : i32
    return %arg0, %c0_i32 : i32, i32
  }
  func.func @transform_1(%arg0: i32) -> (i32, i32) {
    %c0_i32 = arith.constant 0 : i32
    %c0_i32_0 = arith.constant 0 : i32
    return %arg0, %c0_i32 : i32, i32
  }
}

</mosaic_0001>

<bundles_post_ra>
// kernel: tpu_custom_call.1
= control target key start
LH: loop header
LB: loop body
LE: loop exit
PB: predicated region body
PF: predicated region fallthrough
CT: control target
= control target key end

     0   :  { %6 = vsyncpa [#allocation3], 0  ;;  %s126_s0 = inlined_call_operand.hbm [shape: f32[1,2048], index: 0, kind: input, shape index: {}]   ;;  %s127_s1 = inlined_call_operand.hbm [shape: f32[1,2048], index: 1, kind: output, shape index: {}]  }
   0x1   :  { %7 = vsyncpa [#allocation4], 0  ;;  %s13_s8 = sshll.u32 %s126_s0, 4  ;;  %s107_s9 = smov [#allocation2]   ;;  %s14_s8 = int_to_ptr.hbm [resolvable:$true] %s13_s8 }
   0x2   :  { %s15_s10 = sshll.u32 %s107_s9, 4  ;;  %s16_s10 = int_to_ptr.vmem [resolvable:$true] %s15_s10 }
   0x3   :  { %18 = dma.hbm_to_vmem [thread:$0]  %s14_s8, 256, %s16_s10, [#allocation3]  }
   0x4   :  { %103 = dma.done.wait [#allocation3], 256  }
   0x5   :  { %104 = vsyncadd [#allocation3], 4294967040  ;;  %s108_s11 = smov [#allocation5]   ;;  %s40_s15 = sshll.u32 %s127_s1, 4  ;;  %v23_v0 = vld [vmem:[#allocation2] sm:$0xff]  ;;  %v24_v1 = vld [vmem:[#allocation2 + $0x8] sm:$0xff]  ;;  %s41_s15 = int_to_ptr.hbm [resolvable:$true] %s40_s15 }
   0x6   :  { %s38_s12 = sshll.u32 %s108_s11, 4  ;;  %vm25_vm0 = vcmp.ge.f32.partialorder %v23_v0, 0.0  ;;  %vm26_vm1 = vcmp.ge.f32.partialorder %v24_v1, 0.0  ;;  %v109_v2 = vmov 0.0   ;;  %s39_s12 = int_to_ptr.vmem [resolvable:$true] %s38_s12 }
   0x7   :  { %v50_v3 = vsel %vm25_vm0, 1.0, %v109_v2  ;;  %v51_v4 = vsel %vm26_vm1, 1.0, %v109_v2 }
   0x8   :  { %31 = vst [vmem:[#allocation5] sm:$0xff] %v50_v3 }
   0x9   :  { %32 = vst [vmem:[#allocation5 + $0x8] sm:$0xff] %v51_v4 }
   0xa   :  { %43 = dma.vmem_to_hbm [thread:$0]  %s39_s12, 256, %s41_s15, [#allocation4]  }
   0xb   :  { %105 = dma.done.wait [#allocation4], 256  }
   0xc   :  { %106 = vsyncadd [#allocation4], 4294967040 }
   0xd   :  { %48 = vsyncpa [#allocation3], 1 }
   0xe   :  { %49 = vsyncpa [#allocation4], 1 }

</bundles_post_ra>
